<compile_context>
chip_gen: v7x
topology: tpu7x:2x2x1
jax: 0.10.0
libtpu: 0.0.40
codegen_flags: <defaults>
</compile_context>

<pallas_src>
import functools

import jax
import jax.numpy as jnp
from jax.experimental import pallas as pl
from jax.experimental.pallas import tpu as pltpu

BN_EPS = 1e-5


def _round_up(n, m):
    return (n + m - 1) // m * m


def _cdiv(a, b):
    return -(-a // b)


def _pad2(a, rows, cols):
    r, c = a.shape
    if r == rows and c == cols:
        return a
    return jnp.pad(a, ((0, rows - r), (0, cols - c)))


# --------------------------------------------------------------------------
# Fused single-call path (small batch): stats + normalize + matmul, x read once.
# --------------------------------------------------------------------------
def fused_head_kernel(x_ref, gamma_ref, beta_ref, w_ref, b_ref, o_ref, *, batch):
    n_pad = x_ref.shape[0] - batch                      # static padded-row count
    x = x_ref[...].astype(jnp.float32)                  # (B_p, D_in_p)
    inv_n = jnp.float32(1.0 / batch)

    mean = jnp.sum(x, axis=0, keepdims=True) * inv_n    # padded rows are zero
    xc = x - mean
    # Padded rows are exactly zero, so each contributes mean^2 to sum(xc^2);
    # subtract that closed-form correction instead of building a row mask.
    var = (jnp.sum(xc * xc, axis=0, keepdims=True)
           - jnp.float32(n_pad) * mean * mean) * inv_n  # exact biased variance

    s = gamma_ref[...] * jax.lax.rsqrt(var + BN_EPS)    # (1, D_in_p)
    x_hat = xc * s + beta_ref[...]                      # full BN affine

    y = jnp.dot(x_hat.astype(jnp.bfloat16), w_ref[...],     # bf16 MXU, f32 acc
                preferred_element_type=jnp.float32)
    o_ref[...] = (y + b_ref[...]).astype(o_ref.dtype)


# --------------------------------------------------------------------------
# Tiled path, pass 1: single sweep over batch tiles, f32 sum / sum-of-squares.
# grid = (nbt,), "arbitrary" (accumulators resident across the axis).
# --------------------------------------------------------------------------
def bn_stats_kernel(x_ref, mean_ref, var_ref, *, batch):
    i = pl.program_id(0)
    x = x_ref[...].astype(jnp.float32)                  # zero-padded rows add 0

    @pl.when(i == 0)
    def _():
        mean_ref[...] = jnp.zeros_like(mean_ref)
        var_ref[...] = jnp.zeros_like(var_ref)

    mean_ref[...] += jnp.sum(x, axis=0, keepdims=True)
    var_ref[...] += jnp.sum(x * x, axis=0, keepdims=True)

    @pl.when(i == pl.num_programs(0) - 1)
    def _():
        inv_n = jnp.float32(1.0 / batch)
        m = mean_ref[...] * inv_n
        mean_ref[...] = m
        var_ref[...] = var_ref[...] * inv_n - m * m     # f32 accum keeps this sane


# --------------------------------------------------------------------------
# Tiled path, pass 2: one row-broadcast scale, bf16 MXU matmul, folded bias.
# grid = (nbt, nnt), both "parallel".  All BN-fold work was hoisted to XLA.
# --------------------------------------------------------------------------
def bn_linear_kernel(s_ref, bias_ref, w_ref, x_ref, o_ref):
    x_s = (x_ref[...].astype(jnp.float32) * s_ref[...]).astype(jnp.bfloat16)
    y = jnp.dot(x_s, w_ref[...], preferred_element_type=jnp.float32)
    o_ref[...] = (y + bias_ref[...]).astype(o_ref.dtype)   # lane-dense, unmasked


# --------------------------------------------------------------------------
# Wrapper
# --------------------------------------------------------------------------
def custom_head(x, gamma, beta, w_t, b, *, block_rows=512):
    """x: (B, D_in); gamma/beta: (1, D_in); w_t: (D_in, D_out); b: (1, D_out)."""
    B, D_in = x.shape
    D_out = w_t.shape[1]
    out_dtype = x.dtype
    itemsize_x = jnp.dtype(x.dtype).itemsize
    itemsize_o = jnp.dtype(out_dtype).itemsize

    # Lane-dense padding.  Prefer 256-wide N once the head is wide enough
    # (v6e/v7x MXU is 2x256x256); 128 is native on v5e and for tiny heads.
    D_in_p = _round_up(D_in, 128)
    D_out_p = _round_up(D_out, 256) if D_out > 128 else _round_up(D_out, 128)

    # v5e's default scoped VMEM is 16 MiB: shrink row tiles for very wide inputs.
    if D_in_p >= 2048:
        block_rows = min(block_rows, 256)

    # N-tiling keeps the resident bf16 W block <= ~16 MiB (v7x: 64 MiB physical).
    if D_in_p * D_out_p * 2 > (16 << 20):
        tn = 512
        D_out_p = _round_up(D_out_p, tn)
    else:
        tn = D_out_p
    nnt = D_out_p // tn

    # Balanced row tiles: minimize dead batch padding (<= 7 rows).
    n_target = max(1, _cdiv(B, block_rows))
    tb = _round_up(_cdiv(B, n_target), 8)
    B_p = _round_up(B, tb)
    nbt = B_p // tb

    x_p = _pad2(x, B_p, D_in_p)
    gamma_p = _pad2(gamma, 1, D_in_p)
    beta_p = _pad2(beta, 1, D_in_p)
    w_f32 = _pad2(w_t, D_in_p, D_out_p)
    w_bf16 = w_f32.astype(jnp.bfloat16)        # cast ONCE in the wrapper
    b_p = _pad2(b, 1, D_out_p)

    # ---- fused single-call path: whole problem fits comfortably in VMEM ----
    fused_bytes = (B_p * D_in_p * 4 + D_in_p * D_out_p * 2
                   + B_p * D_out_p * itemsize_o + 3 * D_in_p * 4 + D_out_p * 4)
    if B <= block_rows and fused_bytes <= (24 << 20):
        out_p = pl.pallas_call(
            functools.partial(fused_head_kernel, batch=B),
            out_shape=jax.ShapeDtypeStruct((B_p, D_out_p), out_dtype),
            grid=(1,),
            in_specs=[
                pl.BlockSpec((B_p, D_in_p), lambda i: (0, 0)),      # x (whole)
                pl.BlockSpec((1, D_in_p), lambda i: (0, 0)),        # gamma
                pl.BlockSpec((1, D_in_p), lambda i: (0, 0)),        # beta
                pl.BlockSpec((D_in_p, D_out_p), lambda i: (0, 0)),  # W (bf16)
                pl.BlockSpec((1, D_out_p), lambda i: (0, 0)),       # b
            ],
            out_specs=pl.BlockSpec((B_p, D_out_p), lambda i: (0, 0)),
            compiler_params=pltpu.CompilerParams(
                dimension_semantics=("arbitrary",),
                vmem_limit_bytes=int(min(64 << 20,
                                         max(32 << 20, 2 * fused_bytes)))),
            cost_estimate=pl.CostEstimate(
                flops=2 * B_p * D_in_p * D_out_p,
                transcendentals=0,
                bytes_accessed=int(B_p * D_in_p * itemsize_x
                                   + D_in_p * D_out_p * 2
                                   + B_p * D_out_p * itemsize_o)),
        )(x_p, gamma_p, beta_p, w_bf16, b_p)
        return out_p[:B, :D_out]

    # ---- pass 1: exact full-batch BN statistics in a single sweep over x ----
    mean, var = pl.pallas_call(
        functools.partial(bn_stats_kernel, batch=B),
        out_shape=(jax.ShapeDtypeStruct((1, D_in_p), jnp.float32),
                   jax.ShapeDtypeStruct((1, D_in_p), jnp.float32)),
        grid=(nbt,),
        in_specs=[pl.BlockSpec((tb, D_in_p), lambda i: (i, 0))],
        out_specs=(pl.BlockSpec((1, D_in_p), lambda i: (0, 0)),
                   pl.BlockSpec((1, D_in_p), lambda i: (0, 0))),
        compiler_params=pltpu.CompilerParams(
            dimension_semantics=("arbitrary",),
            vmem_limit_bytes=int(min(64 << 20,
                                     max(32 << 20,
                                         4 * tb * D_in_p * itemsize_x)))),
    )(x_p)

    # ---- BN fold (grid-invariant): once in plain XLA, not per grid step ----
    s = gamma_p * jax.lax.rsqrt(var + BN_EPS)            # (1, D_in_p)
    shift = beta_p - mean * s                            # (1, D_in_p)
    bias = shift @ w_f32 + b_p                           # (1, D_out_p), f32

    # ---- pass 2: batch/N-parallel scale + bf16 MXU matmul ----
    # TODO(synk): if profiling shows exposed DMA (tiny D_out), bump the x-tile
    # BlockSpec to pipeline_mode=pl.Buffered(3).
    est = (D_in_p * tn * 2 + 2 * tb * D_in_p * itemsize_x
           + 2 * tb * tn * itemsize_o + 2 * (D_in_p + tn) * 4)
    out_p = pl.pallas_call(
        bn_linear_kernel,
        out_shape=jax.ShapeDtypeStruct((B_p, D_out_p), out_dtype),
        grid=(nbt, nnt),
        in_specs=[
            pl.BlockSpec((1, D_in_p), lambda i, j: (0, 0)),    # s      (resident)
            pl.BlockSpec((1, tn), lambda i, j: (0, j)),        # folded bias
            pl.BlockSpec((D_in_p, tn), lambda i, j: (0, j)),   # W bf16 (blocked in N)
            pl.BlockSpec((tb, D_in_p), lambda i, j: (i, 0)),   # x tile
        ],
        out_specs=pl.BlockSpec((tb, tn), lambda i, j: (i, j)),
        compiler_params=pltpu.CompilerParams(
            dimension_semantics=("parallel", "parallel"),
            vmem_limit_bytes=int(min(64 << 20, max(32 << 20, 2 * est)))),
        cost_estimate=pl.CostEstimate(
            flops=2 * B_p * D_in_p * D_out_p,
            transcendentals=0,
            bytes_accessed=int(B_p * D_in_p * itemsize_x
                               + D_in_p * D_out_p * 2
                               + B_p * D_out_p * itemsize_o)),
    )(s, bias, w_bf16, x_p)

    return out_p[:B, :D_out]


# --------------------------------------------------------------------------
# Demo / correctness check
# --------------------------------------------------------------------------
def _reference(x, gamma, beta, w_t, b):
    mean = jnp.mean(x, axis=0, keepdims=True)
    var = jnp.mean((x - mean) ** 2, axis=0, keepdims=True)
    x_bn = (x - mean) * jax.lax.rsqrt(var + BN_EPS) * gamma + beta
    return x_bn @ w_t + b


if __name__ == "__main__":
    D_IN, D_OUT = 128, 64
    key = jax.random.PRNGKey(0)
    kg, kb, kw, kbias, kx1, kx2 = jax.random.split(key, 6)

    gamma = 1.0 + 0.1 * jax.random.normal(kg, (1, D_IN), dtype=jnp.float32)
    beta = 0.1 * jax.random.normal(kb, (1, D_IN), dtype=jnp.float32)
    w = jax.random.normal(kw, (D_OUT, D_IN), dtype=jnp.float32) / jnp.sqrt(D_IN)
    w_t = jnp.transpose(w)                                   # (D_in, D_out)
    b = 0.01 * jax.random.normal(kbias, (1, D_OUT), dtype=jnp.float32)

    # --- test 1: CustomHead demo shape (batch=8) -> fused single-kernel path ---
    x1 = jax.random.normal(kx1, (8, D_IN), dtype=jnp.float32)
    out1 = jax.block_until_ready(custom_head(x1, gamma, beta, w_t, b))
    ref1 = _reference(x1, gamma, beta, w_t, b)
    assert out1.shape == ref1.shape, (out1.shape, ref1.shape)
    assert jnp.allclose(out1, ref1, atol=5e-2, rtol=5e-2), "fused path mismatch"

    # --- test 2: force the tiled two-pass path (batch=48, 16-row tiles) ---
    x2 = jax.random.normal(kx2, (48, D_IN), dtype=jnp.float32)
    out2 = jax.block_until_ready(
        custom_head(x2, gamma, beta, w_t, b, block_rows=16))
    ref2 = _reference(x2, gamma, beta, w_t, b)
    assert out2.shape == ref2.shape, (out2.shape, ref2.shape)
    assert jnp.allclose(out2, ref2, atol=5e-2, rtol=5e-2), "tiled path mismatch"

    print("KERNEL_OK")
</pallas_src>

<mosaic_0001>
module attributes {stable_mosaic.version = 11 : i64} {
  func.func @fused_head_kernel(%arg0: i32, %arg1: memref<8x128xf32, #tpu.memory_space<vmem>>, %arg2: memref<1x128xf32, #tpu.memory_space<vmem>>, %arg3: memref<1x128xf32, #tpu.memory_space<vmem>>, %arg4: memref<128x128xbf16, #tpu.memory_space<vmem>>, %arg5: memref<1x128xf32, #tpu.memory_space<vmem>>, %arg6: memref<8x128xf32, #tpu.memory_space<vmem>>) attributes {dimension_semantics = [#tpu.dimension_semantics<arbitrary>], iteration_bounds = array<i64: 1>, scalar_prefetch = 0 : i64, scratch_operands = 0 : i64, tpu.core_type = #tpu.core_type<tc>, window_params = [{pipeline_mode = #tpu.pipeline_mode<synchronous>, transform_indices = @transform_0, window_bounds = array<i64: 8, 128>}, {pipeline_mode = #tpu.pipeline_mode<synchronous>, transform_indices = @transform_1, window_bounds = array<i64: 1, 128>}, {pipeline_mode = #tpu.pipeline_mode<synchronous>, transform_indices = @transform_2, window_bounds = array<i64: 1, 128>}, {pipeline_mode = #tpu.pipeline_mode<synchronous>, transform_indices = @transform_3, window_bounds = array<i64: 128, 128>}, {pipeline_mode = #tpu.pipeline_mode<synchronous>, transform_indices = @transform_4, window_bounds = array<i64: 1, 128>}, {pipeline_mode = #tpu.pipeline_mode<synchronous>, transform_indices = @transform_5, window_bounds = array<i64: 8, 128>}]} {
    %c0 = arith.constant 0 : index
    %c0_0 = arith.constant 0 : index
    %0 = vector.load %arg1[%c0, %c0_0] : memref<8x128xf32, #tpu.memory_space<vmem>>, vector<8x128xf32>
    %cst = arith.constant dense<0.000000e+00> : vector<128xf32>
    %1 = vector.multi_reduction <add>, %0, %cst [0] : vector<8x128xf32> to vector<128xf32>
    %2 = vector.shape_cast %1 : vector<128xf32> to vector<1x128xf32>
    %cst_1 = arith.constant 1.250000e-01 : f32
    %3 = vector.broadcast %cst_1 : f32 to vector<1x128xf32>
    %4 = arith.mulf %2, %3 : vector<1x128xf32>
    %5 = vector.broadcast %4 : vector<1x128xf32> to vector<8x128xf32>
    %6 = arith.subf %0, %5 : vector<8x128xf32>
    %7 = arith.mulf %6, %6 : vector<8x128xf32>
    %cst_2 = arith.constant dense<0.000000e+00> : vector<128xf32>
    %8 = vector.multi_reduction <add>, %7, %cst_2 [0] : vector<8x128xf32> to vector<128xf32>
    %9 = vector.shape_cast %8 : vector<128xf32> to vector<1x128xf32>
    %cst_3 = arith.constant 0.000000e+00 : f32
    %10 = vector.broadcast %cst_3 : f32 to vector<1x128xf32>
    %11 = arith.mulf %10, %4 : vector<1x128xf32>
    %12 = arith.mulf %11, %4 : vector<1x128xf32>
    %13 = arith.subf %9, %12 : vector<1x128xf32>
    %cst_4 = arith.constant 1.250000e-01 : f32
    %14 = vector.broadcast %cst_4 : f32 to vector<1x128xf32>
    %15 = arith.mulf %13, %14 : vector<1x128xf32>
    %c0_5 = arith.constant 0 : index
    %c0_6 = arith.constant 0 : index
    %16 = vector.load %arg2[%c0_5, %c0_6] : memref<1x128xf32, #tpu.memory_space<vmem>>, vector<1x128xf32>
    %cst_7 = arith.constant 9.99999974E-6 : f32
    %17 = vector.broadcast %cst_7 : f32 to vector<1x128xf32>
    %18 = arith.addf %15, %17 : vector<1x128xf32>
    %19 = math.rsqrt %18 : vector<1x128xf32>
    %20 = arith.mulf %16, %19 : vector<1x128xf32>
    %21 = vector.broadcast %20 : vector<1x128xf32> to vector<8x128xf32>
    %22 = arith.mulf %6, %21 : vector<8x128xf32>
    %c0_8 = arith.constant 0 : index
    %c0_9 = arith.constant 0 : index
    %23 = vector.load %arg3[%c0_8, %c0_9] : memref<1x128xf32, #tpu.memory_space<vmem>>, vector<1x128xf32>
    %24 = vector.broadcast %23 : vector<1x128xf32> to vector<8x128xf32>
    %25 = arith.addf %22, %24 : vector<8x128xf32>
    %26 = arith.truncf %25 : vector<8x128xf32> to vector<8x128xbf16>
    %c0_10 = arith.constant 0 : index
    %c0_11 = arith.constant 0 : index
    %27 = vector.load %arg4[%c0_10, %c0_11] : memref<128x128xbf16, #tpu.memory_space<vmem>>, vector<128x128xbf16>
    %cst_12 = arith.constant dense<0.000000e+00> : vector<8x128xf32>
    %28 = tpu.matmul %26, %27, %cst_12 {dimension_numbers = #tpu.dot_dimension_numbers<[1], [0], [0], [1], [0, 0, 1, 1], [], []>} : vector<8x128xbf16>, vector<128x128xbf16>, vector<8x128xf32> -> vector<8x128xf32>
    %c0_13 = arith.constant 0 : index
    %c0_14 = arith.constant 0 : index
    %29 = vector.load %arg5[%c0_13, %c0_14] : memref<1x128xf32, #tpu.memory_space<vmem>>, vector<1x128xf32>
    %30 = vector.broadcast %29 : vector<1x128xf32> to vector<8x128xf32>
    %31 = arith.addf %28, %30 : vector<8x128xf32>
    %c0_15 = arith.constant 0 : index
    %c0_16 = arith.constant 0 : index
    %32 = vector.load %arg6[%c0_15, %c0_16] : memref<8x128xf32, #tpu.memory_space<vmem>>, vector<8x128xf32>
    tpu.vector_store %arg6[%c0_15, %c0_16], %31 {strides = array<i32>} : memref<8x128xf32, #tpu.memory_space<vmem>>, vector<8x128xf32>,
    return
  }
  func.func @transform_0(%arg0: i32) -> (i32, i32) {
    %c0_i32 = arith.constant 0 : i32
    %c0_i32_0 = arith.constant 0 : i32
    %c0_i32_1 = arith.constant 0 : i32
    return %c0_i32, %c0_i32_0 : i32, i32
  }
  func.func @transform_1(%arg0: i32) -> (i32, i32) {
    %c0_i32 = arith.constant 0 : i32
    %c0_i32_0 = arith.constant 0 : i32
    %c0_i32_1 = arith.constant 0 : i32
    return %c0_i32, %c0_i32_0 : i32, i32
  }
  func.func @transform_2(%arg0: i32) -> (i32, i32) {
    %c0_i32 = arith.constant 0 : i32
    %c0_i32_0 = arith.constant 0 : i32
    %c0_i32_1 = arith.constant 0 : i32
    return %c0_i32, %c0_i32_0 : i32, i32
  }
  func.func @transform_3(%arg0: i32) -> (i32, i32) {
    %c0_i32 = arith.constant 0 : i32
    %c0_i32_0 = arith.constant 0 : i32
    %c0_i32_1 = arith.constant 0 : i32
    return %c0_i32, %c0_i32_0 : i32, i32
  }
  func.func @transform_4(%arg0: i32) -> (i32, i32) {
    %c0_i32 = arith.constant 0 : i32
    %c0_i32_0 = arith.constant 0 : i32
    %c0_i32_1 = arith.constant 0 : i32
    return %c0_i32, %c0_i32_0 : i32, i32
  }
  func.func @transform_5(%arg0: i32) -> (i32, i32) {
    %c0_i32 = arith.constant 0 : i32
    %c0_i32_0 = arith.constant 0 : i32
    %c0_i32_1 = arith.constant 0 : i32
    return %c0_i32, %c0_i32_0 : i32, i32
  }
}

</mosaic_0001>

<bundles_post_ra>
// kernel: tpu_custom_call.1
= control target key start
LH: loop header
LB: loop body
LE: loop exit
PB: predicated region body
PF: predicated region fallthrough
CT: control target
= control target key end

     0   :  { %10 = vsyncpa [#allocation3], 0  ;;  %s433_s0 = inlined_call_operand.hbm [shape: f32[8,128], index: 0, kind: input, shape index: {}]   ;;  %s434_s1 = inlined_call_operand.vmem [shape: f32[1,128], index: 1, kind: input, shape index: {}]   ;;  %s435_s2 = inlined_call_operand.vmem [shape: f32[1,128], index: 2, kind: input, shape index: {}]   ;;  %s436_s3 = inlined_call_operand.hbm [shape: bf16[128,128], index: 3, kind: input, shape index: {}]   ;;  %s437_s4 = inlined_call_operand.vmem [shape: f32[1,128], index: 4, kind: input, shape index: {}]   ;;  %s438_s5 = inlined_call_operand.hbm [shape: f32[8,128], index: 5, kind: output, shape index: {}]  }
   0x1   :  { %11 = vsyncpa [#allocation6], 0 }
   0x2   :  { %12 = vsyncpa [#allocation4], 0  ;;  %s344_s18 = smov [#allocation2]   ;;  %s345_s20 = smov [#allocation5]  }
   0x3   :  { %s19_s19 = sshll.u32 %s344_s18, 4  ;;  %s32_s21 = sshll.u32 %s345_s20, 4  ;;  %s20_s19 = int_to_ptr.vmem [resolvable:$true] %s19_s19  ;;  %s381_s21 = int_to_ptr.vmem [resolvable:$true] %s32_s21 }
   0x4   :  { %s272_s24 = scalar_lea.hbm %s433_s0, 128 }
   0x5   :  { %p273_p0 = scmp.ne.s32.totalorder %s433_s0, %s272_s24  ;;  %p276_p1 = scmp.lt.u32.totalorder %s272_s24, %s433_s0 }
   0x7   :  { %p278_p2 = pnand %p276_p1, %p273_p0 }
   0x9   :  { %281 = shalt.err (!%p278_p2)
}
   0xa   :  { %s282_s29 = scalar_lea.vmem %s20_s19, 128  ;;  %p287_p4 = scmp.lt.s32.totalorder %s20_s19, %s20_s19 }
   0xb   :  { %p283_p3 = scmp.ne.s32.totalorder %s20_s19, %s282_s29  ;;  %p288_p5 = scmp.lt.s32.totalorder %s282_s29, %s282_s29 }
   0xd   :  { %p289_p6 = por %p288_p5, %p287_p4 }
   0xf   :  { %p290_p7 = pnand %p289_p6, %p283_p3 }
  0x11   :  { %293 = shalt.err (!%p290_p7)
}
  0x12   :  { %22 = dma.hbm_to_vmem [thread:$0]  %s433_s0, 128, %s20_s19, [#allocation3]  }
  0x13   :  { %s294_s9 = scalar_lea.hbm %s436_s3, 1024 }
  0x14   :  { %p295_p8 = scmp.ne.s32.totalorder %s436_s3, %s294_s9  ;;  %p298_p9 = scmp.lt.u32.totalorder %s294_s9, %s436_s3 }
  0x16   :  { %p300_p10 = pnand %p298_p9, %p295_p8 }
  0x18   :  { %303 = shalt.err (!%p300_p10)
}
  0x19   :  { %s304_s14 = scalar_lea.vmem %s381_s21, 1024  ;;  %p309_p12 = scmp.lt.s32.totalorder %s381_s21, %s381_s21 }
  0x1a   :  { %p305_p11 = scmp.ne.s32.totalorder %s381_s21, %s304_s14  ;;  %p310_p13 = scmp.lt.s32.totalorder %s304_s14, %s304_s14 }
  0x1c   :  { %p311_p0 = por %p310_p13, %p309_p12 }
  0x1e   :  { %p312_p1 = pnand %p311_p0, %p305_p11 }
  0x20   :  { %315 = shalt.err (!%p312_p1)
}
  0x21   :  { %s346_s0 = smov 64   ;;  %s347_s15 = smov 4  }
  0x22   :  { %38 = dma.hbm_to_vmem [thread:$0]  %s436_s3, 1024, %s381_s21, [#allocation6], %s346_s0, %s346_s0, %s347_s15  }
  0x23   :  { %338 = dma.done.wait [#allocation3], 128  }
  0x24   :  { %339 = vsyncadd [#allocation3], 4294967168 }
  0x25   :  { %340 = dma.done.wait [#allocation6], 1024  }
  0x26   :  { %341 = vsyncadd [#allocation6], 4294966272  ;;  %v348_v0 = vmov 0.0   ;;  %vm349_vm0 = vmmov 0   ;;  %v262_v1 = vld [vmem:[#allocation5] sm:$0xff]   ;;  %v263_v2 = vld [vmem:[#allocation5 + $0x8] sm:$0xff]   ;;  %v73_v30 = vlaneseq }
  0x27   :  { %235 = vmatprep.subr.bf16.mxu0 %v348_v0  ;;  %251 = vmatprep.mubr.msk.bf16.mxu0 %vm349_vm0, %v348_v0  ;;  %v264_v3 = vld [vmem:[#allocation5 + $0x10] sm:$0xff]   ;;  %v48_v4 = vld [vmem:[#allocation2] sm:$0xff]  ;;  %v266_v9 = vld [vmem:[#allocation5 + $0x20] sm:$0xff]   ;;  %s350_s23 = smov [#allocation7]  }
  0x28   :  { %236 = vmatpush3.bf16.msra.mxu0 %v262_v1  ;;  %v49_v5 = vrot.slane %v48_v4, 4  ;;  %v265_v6 = vld [vmem:[#allocation5 + $0x18] sm:$0xff]   ;;  %v267_v12 = vld [vmem:[#allocation5 + $0x28] sm:$0xff]   ;;  %v268_v15 = vld [vmem:[#allocation5 + $0x30] sm:$0xff]   ;;  %v74_v31 = vshrl.u32 %v73_v30, 7  ;;  %s206_s24 = sshll.u32 %s350_s23, 4  ;;  %s207_s24 = int_to_ptr.vmem [resolvable:$true] %s206_s24 }
  0x29   :  { %237 = vmatprep.subr.bf16.mxu0 %v348_v0  ;;  %v269_v18 = vld [vmem:[#allocation5 + $0x38] sm:$0xff]   ;;  %p321_p3 = scmp.lt.s32.totalorder %s207_s24, %s207_s24 }
  0x2a   :  { %v50_v7 = vadd.f32 %v49_v5, %v48_v4  ;;  %v68_v32 = vld [vmem:[%s434_s1] sm:$0x1]  ;;  %v75_v33 = vsub.s32 0, %v74_v31  ;;  %s316_s1 = scalar_lea.vmem %s207_s24, 128 }
  0x2b   :  { %v216_v37 = vld [vmem:[%s435_s2] ss:$0 sm:$0xff]  ;;  %p317_p2 = scmp.ne.s32.totalorder %s207_s24, %s316_s1  ;;  %p322_p4 = scmp.lt.s32.totalorder %s316_s1, %s316_s1 }
  0x2c   :  { %238 = vmatpush3.bf16.msra.mxu0 %v263_v2  ;;  %v51_v8 = vrot.slane %v50_v7, 2  ;;  %v217_v41 = vld [vmem:[%s437_s4] ss:$0 sm:$0xff] }
  0x2d   :  { %239 = vmatprep.subr.bf16.mxu0 %v348_v0  ;;  %p323_p5 = por %p322_p4, %p321_p3 }
  0x2e   :  { %v52_v10 = vadd.f32 %v51_v8, %v50_v7 }
  0x2f   :  { %p324_p6 = pnand %p323_p5, %p317_p2 }
  0x30   :  { %240 = vmatpush3.bf16.msra.mxu0 %v264_v3  ;;  %v53_v11 = vrot.slane %v52_v10, 1 }
  0x31   :  { %241 = vmatprep.subr.bf16.mxu0 %v348_v0 }
  0x32   :  { %v54_v13 = vadd.f32 %v53_v11, %v52_v10 }
  0x34   :  { %242 = vmatpush3.bf16.msra.mxu0 %v265_v6  ;;  %v55_v14 = vmul.f32 0.125, %v54_v13 }
  0x35   :  { %243 = vmatprep.subr.bf16.mxu0 %v348_v0 }
  0x36   :  { %v56_v16 = vsub.f32 %v48_v4, %v55_v14  ;;  %v64_v22 = vmul.f32 0.0, %v55_v14 }
  0x38   :  { %244 = vmatpush3.bf16.msra.mxu0 %v266_v9  ;;  %v57_v17 = vmul.f32 %v56_v16, %v56_v16  ;;  %v65_v25 = vmul.f32 %v64_v22, %v55_v14 }
  0x39   :  { %245 = vmatprep.subr.bf16.mxu0 %v348_v0 }
  0x3a   :  { %v58_v19 = vrot.slane %v57_v17, 4 }
  0x3c   :  { %246 = vmatpush3.bf16.msra.mxu0 %v267_v12  ;;  %v59_v20 = vadd.f32 %v58_v19, %v57_v17 }
  0x3d   :  { %247 = vmatprep.subr.bf16.mxu0 %v348_v0 }
  0x3e   :  { %v60_v21 = vrot.slane %v59_v20, 2 }
  0x40   :  { %248 = vmatpush3.bf16.msra.mxu0 %v268_v15  ;;  %v61_v23 = vadd.f32 %v60_v21, %v59_v20 }
  0x41   :  { %249 = vmatprep.subr.bf16.mxu0 %v348_v0 }
  0x42   :  { %v62_v24 = vrot.slane %v61_v23, 1 }
  0x44   :  { %250 = vmatpush3.bf16.msra.mxu0 %v269_v18  ;;  %v63_v26 = vadd.f32 %v62_v24, %v61_v23 }
  0x46   :  { %v66_v27 = vsub.f32 %v63_v26, %v65_v25 }
  0x48   :  { %v67_v28 = vmul.f32 0.125, %v66_v27 }
  0x4a   :  { %v69_v29 = vadd.f32 1e-05, %v67_v28 }
  0x4c   :  { %270 = vrsqrt.f32 %v69_v29 }
  0x56   :  { %v271_v34 = vpop.eup %270 }
  0x57   :  { %v71_v35 = vmul.f32 %v271_v34, %v68_v32 }
  0x59   :  { %v76_v36 = vrot.slane %v71_v35, %v75_v33 }
  0x5b   :  { %v78_v38 = vmul.f32 %v76_v36, %v56_v16 }
  0x5d   :  { %v86_v39 = vadd.f32 %v216_v37, %v78_v38 }
  0x5f   :  { %v87_v40 = vpack.c.bf16 %v86_v39, %v86_v39 }
  0x61   :  { %252 = vmatmul.mubr.bf16.vlgmr.msra.gmra.mrb[0].mxu0 %v87_v40 }
 0x134   :  { %v193_v42 = vpop.f32.mrb[0].mxu0 }
 0x135   :  { %v194_v43 = vadd.f32 %v217_v41, %v193_v42  ;;  %v253_v44 = vpop.f32.mrb[1].mxu0 }
 0x136   :  { %v196_v45 = vpop.f32.mrb[2].mxu0 }
 0x137   :  { %199 = vst [vmem:[#allocation7] sm:$0xff] %v194_v43  ;;  %v254_v46 = vpop.f32.mrb[3].mxu0 }
 0x138   :  { %327 = shalt.err (!%p324_p6)
}
 0x139   :  { %s328_s4 = scalar_lea.hbm %s438_s5, 128 }
 0x13a   :  { %p329_p7 = scmp.ne.s32.totalorder %s438_s5, %s328_s4  ;;  %p332_p8 = scmp.lt.u32.totalorder %s328_s4, %s438_s5 }
 0x13c   :  { %p334_p9 = pnand %p332_p8, %p329_p7 }
 0x13e   :  { %337 = shalt.err (!%p334_p9)
}
 0x13f   :  { %209 = dma.vmem_to_hbm [thread:$0]  %s207_s24, 128, %s438_s5, [#allocation4]  }
 0x140   :  { %342 = dma.done.wait [#allocation4], 128  }
 0x141   :  { %343 = vsyncadd [#allocation4], 4294967168 }
 0x142   :  { %213 = vsyncpa [#allocation3], 1 }
 0x143   :  { %214 = vsyncpa [#allocation6], 1 }
 0x144   :  { %215 = vsyncpa [#allocation4], 1 }

</bundles_post_ra>
